<compile_context>
chip_gen: v7x
topology: tpu7x:2x2x1
jax: 0.10.0
libtpu: 0.0.40
codegen_flags: <defaults>
</compile_context>

<pallas_src>
import functools

import jax
import jax.numpy as jnp
from jax import lax
from jax.experimental import pallas as pl
from jax.experimental.pallas import tpu as pltpu

EPS = 1e-12  # torch.nn.functional.normalize default eps


def _normalize_rows(p):
    """L2-normalize rows of a small (P, M) tile in f32 via rsqrt (== v / max(||v||, eps))."""
    p = p.astype(jnp.float32)
    ss = jnp.sum(p * p, axis=-1, keepdims=True)
    return p * lax.rsqrt(jnp.maximum(ss, EPS * EPS))


def _gate_outputs(x, w, b, p_n, mid_dim):
    """x:(BM,IN) w:(IN,K*M) b:(1,K*M) p_n:(P,M) normalized f32 -> (BM, K*P) f32."""
    # Linear transform: operands hit the MXU in their input dtype, f32 accumulation.
    y = lax.dot_general(
        x, w,
        dimension_numbers=(((1,), (0,)), ((), ())),
        preferred_element_type=jnp.float32,
    ) + b.astype(jnp.float32)                                   # (BM, K*M) f32

    num_tasks = y.shape[1] // mid_dim
    parts = []
    for k in range(num_tasks):                                  # K is tiny & static
        y_k = y[:, k * mid_dim:(k + 1) * mid_dim]               # (BM, M)
        ss = jnp.sum(y_k * y_k, axis=-1, keepdims=True)         # (BM, 1)
        row_scale = lax.rsqrt(jnp.maximum(ss, EPS * EPS))       # == 1/max(||y_k||, eps)
        # Contract last dims of both operands directly: no prototype transpose.
        s = lax.dot_general(
            y_k, p_n,
            dimension_numbers=(((1,), (1,)), ((), ())),
            preferred_element_type=jnp.float32,
        )                                                       # (BM, P)
        parts.append(s * row_scale)
    if num_tasks == 1:
        return parts[0]
    return jnp.concatenate(parts, axis=-1)                      # (BM, K*P) lane-dense


def _gate_kernel_single(x_ref, w_ref, b_ref, p_ref, o_ref, *, mid_dim):
    # Gridless path: normalize the (tiny) prototype tile in-kernel, once, so the
    # whole forward is a single pallas_call with no extra XLA ops around it.
    p_n = _normalize_rows(p_ref[...])
    out = _gate_outputs(x_ref[...], w_ref[...], b_ref[...], p_n, mid_dim)
    o_ref[...] = out.astype(o_ref.dtype)


def _gate_kernel_tiled(x_ref, w_ref, b_ref, pn_ref, o_ref, *, mid_dim):
    # Batch-tiled path: prototypes arrive already normalized (hoisted to wrapper),
    # so nothing task-shared is recomputed per batch tile.
    out = _gate_outputs(x_ref[...], w_ref[...], b_ref[...],
                        pn_ref[...].astype(jnp.float32), mid_dim)
    o_ref[...] = out.astype(o_ref.dtype)


def gate_net_transform(x, transform_weight, transform_bias, prototype, mid_dim,
                       *, block_b=128):
    """
    x                : (B, input_dim)
    transform_weight : (input_dim, K*mid_dim)      == torch.cat(weight_list, dim=1)
    transform_bias   : (K*mid_dim,)                == torch.cat(bias_list,   dim=0)
    prototype        : (K*prompt_length, mid_dim)  == torch.cat(prototype_list, dim=0)
    returns          : (B, K, K*prompt_length) float32
    """
    B, input_dim = x.shape
    in2, km = transform_weight.shape
    assert in2 == input_dim and km % mid_dim == 0
    num_tasks = km // mid_dim
    num_proto, m2 = prototype.shape
    assert m2 == mid_dim

    b2 = transform_bias.reshape(1, km)
    kp = num_tasks * num_proto  # flattened, lane-dense output width

    use_tiled = (block_b is not None) and (B >= 2 * block_b) and (B % block_b == 0)

    if use_tiled:
        # Prototype normalization done once here (tiny), not once per batch tile.
        p_n = _normalize_rows(prototype)
        out2 = pl.pallas_call(
            functools.partial(_gate_kernel_tiled, mid_dim=mid_dim),
            out_shape=jax.ShapeDtypeStruct((B, kp), jnp.float32),
            grid=(B // block_b,),
            in_specs=[
                pl.BlockSpec((block_b, input_dim), lambda i: (i, 0)),
                pl.BlockSpec((input_dim, km), lambda i: (0, 0)),
                pl.BlockSpec((1, km), lambda i: (0, 0)),
                pl.BlockSpec((num_proto, mid_dim), lambda i: (0, 0)),
            ],
            out_specs=pl.BlockSpec((block_b, kp), lambda i: (i, 0)),
            compiler_params=pltpu.CompilerParams(
                # v7x: split batch tiles across the two TensorCores; harmless elsewhere.
                dimension_semantics=("parallel",),
            ),
        )(x, transform_weight, b2, p_n)
    else:
        # Shipped sizes are tiny: a single VMEM block, no grid machinery at all.
        out2 = pl.pallas_call(
            functools.partial(_gate_kernel_single, mid_dim=mid_dim),
            out_shape=jax.ShapeDtypeStruct((B, kp), jnp.float32),
        )(x, transform_weight, b2, prototype)

    return out2.reshape(B, num_tasks, num_proto)


def reference(x, transform_weight, transform_bias, prototype, mid_dim):
    """Pure-JAX mirror of the PyTorch forward (f32-accurate matmuls)."""
    y = jnp.dot(x, transform_weight, precision=lax.Precision.HIGHEST) + transform_bias
    y3 = y.reshape(y.shape[0], -1, mid_dim)
    yn = y3 / jnp.maximum(jnp.sqrt(jnp.sum(y3 * y3, axis=-1, keepdims=True)), EPS)
    pn = prototype / jnp.maximum(
        jnp.sqrt(jnp.sum(prototype * prototype, axis=-1, keepdims=True)), EPS)
    return jnp.einsum("bkd,pd->bkp", yn, pn, precision=lax.Precision.HIGHEST)


if __name__ == "__main__":
    key = jax.random.PRNGKey(0)

    def make_params(k, num_tasks, input_dim, mid_dim, prompt_length):
        ks = jax.random.split(k, 3 * num_tasks)
        weights = [jax.random.normal(ks[3 * t + 0], (input_dim, mid_dim), jnp.float32)
                   for t in range(num_tasks)]
        biases = [jax.random.normal(ks[3 * t + 1], (mid_dim,), jnp.float32)
                  for t in range(num_tasks)]
        protos = [jax.random.normal(ks[3 * t + 2], (prompt_length, mid_dim), jnp.float32)
                  for t in range(num_tasks)]
        W = jnp.concatenate(weights, axis=1)   # torch.cat(dim=1) -> (input_dim, K*mid_dim)
        b = jnp.concatenate(biases, axis=0)    # torch.cat(dim=0) -> (K*mid_dim,)
        P = jnp.concatenate(protos, axis=0)    # torch.cat(dim=0) -> (K*prompt_length, mid_dim)
        return W, b, P

    k1, k2, k3, k4 = jax.random.split(key, 4)

    # Case 1: module-scale shapes -> gridless single-block path.
    input_dim, mid_dim, prompt_length, num_tasks, batch = 32, 32, 8, 3, 8
    W, b, P = make_params(k1, num_tasks, input_dim, mid_dim, prompt_length)
    x = jax.random.normal(k2, (batch, input_dim), jnp.float32)
    out = jax.block_until_ready(gate_net_transform(x, W, b, P, mid_dim))
    ref = reference(x, W, b, P, mid_dim)
    assert out.shape == (batch, num_tasks, num_tasks * prompt_length)
    assert jnp.allclose(out, ref, atol=1e-4, rtol=1e-4), "mismatch vs reference (small)"

    # Case 2: larger batch -> batch-tiled ("parallel") path.
    input_dim, mid_dim, prompt_length, num_tasks, batch = 64, 32, 8, 4, 256
    W, b, P = make_params(k3, num_tasks, input_dim, mid_dim, prompt_length)
    x = jax.random.normal(k4, (batch, input_dim), jnp.float32)
    out = jax.block_until_ready(
        gate_net_transform(x, W, b, P, mid_dim, block_b=128))
    ref = reference(x, W, b, P, mid_dim)
    assert out.shape == (batch, num_tasks, num_tasks * prompt_length)
    assert jnp.allclose(out, ref, atol=1e-4, rtol=1e-4), "mismatch vs reference (tiled)"

    print("KERNEL_OK")
</pallas_src>

<mosaic_0001>
module attributes {stable_mosaic.version = 11 : i64} {
  func.func @_gate_kernel_single(%arg0: memref<8x32xf32, #tpu.memory_space<vmem>>, %arg1: memref<32x96xf32, #tpu.memory_space<vmem>>, %arg2: memref<1x96xf32, #tpu.memory_space<vmem>>, %arg3: memref<24x32xf32, #tpu.memory_space<vmem>>, %arg4: memref<8x72xf32, #tpu.memory_space<vmem>>) attributes {dimension_semantics = [], scalar_prefetch = 0 : i64, scratch_operands = 0 : i64, tpu.core_type = #tpu.core_type<tc>} {
    %c0 = arith.constant 0 : index
    %c0_0 = arith.constant 0 : index
    %0 = vector.load %arg3[%c0, %c0_0] : memref<24x32xf32, #tpu.memory_space<vmem>>, vector<24x32xf32>
    %1 = arith.mulf %0, %0 : vector<24x32xf32>
    %cst = arith.constant dense<0.000000e+00> : vector<24xf32>
    %2 = vector.multi_reduction <add>, %1, %cst [1] : vector<24x32xf32> to vector<24xf32>
    %3 = vector.shape_cast %2 : vector<24xf32> to vector<24x1xf32>
    %cst_1 = arith.constant 1.000000e-24 : f32
    %4 = vector.broadcast %cst_1 : f32 to vector<24x1xf32>
    %5 = arith.maximumf %3, %4 : vector<24x1xf32>
    %6 = math.rsqrt %5 : vector<24x1xf32>
    %7 = vector.broadcast %6 : vector<24x1xf32> to vector<24x32xf32>
    %8 = arith.mulf %0, %7 : vector<24x32xf32>
    %c0_2 = arith.constant 0 : index
    %c0_3 = arith.constant 0 : index
    %9 = vector.load %arg0[%c0_2, %c0_3] : memref<8x32xf32, #tpu.memory_space<vmem>>, vector<8x32xf32>
    %c0_4 = arith.constant 0 : index
    %c0_5 = arith.constant 0 : index
    %10 = vector.load %arg1[%c0_4, %c0_5] : memref<32x96xf32, #tpu.memory_space<vmem>>, vector<32x96xf32>
    %c0_6 = arith.constant 0 : index
    %c0_7 = arith.constant 0 : index
    %11 = vector.load %arg2[%c0_6, %c0_7] : memref<1x96xf32, #tpu.memory_space<vmem>>, vector<1x96xf32>
    %cst_8 = arith.constant dense<0.000000e+00> : vector<8x96xf32>
    %12 = tpu.matmul %9, %10, %cst_8 {dimension_numbers = #tpu.dot_dimension_numbers<[1], [0], [0], [1], [0, 0, 1, 1], [], []>} : vector<8x32xf32>, vector<32x96xf32>, vector<8x96xf32> -> vector<8x96xf32>
    %13 = vector.broadcast %11 : vector<1x96xf32> to vector<8x96xf32>
    %14 = arith.addf %12, %13 : vector<8x96xf32>
    %15 = vector.extract_strided_slice %14 {offsets = [0, 0], sizes = [8, 32], strides = [1, 1]} : vector<8x96xf32> to vector<8x32xf32>
    %16 = arith.mulf %15, %15 : vector<8x32xf32>
    %cst_9 = arith.constant dense<0.000000e+00> : vector<8xf32>
    %17 = vector.multi_reduction <add>, %16, %cst_9 [1] : vector<8x32xf32> to vector<8xf32>
    %18 = vector.shape_cast %17 : vector<8xf32> to vector<8x1xf32>
    %cst_10 = arith.constant 1.000000e-24 : f32
    %19 = vector.broadcast %cst_10 : f32 to vector<8x1xf32>
    %20 = arith.maximumf %18, %19 : vector<8x1xf32>
    %21 = math.rsqrt %20 : vector<8x1xf32>
    %cst_11 = arith.constant dense<0.000000e+00> : vector<8x24xf32>
    %22 = tpu.matmul %15, %8, %cst_11 {dimension_numbers = #tpu.dot_dimension_numbers<[1], [1], [0], [0], [0, 0, 1, 0], [], []>} : vector<8x32xf32>, vector<24x32xf32>, vector<8x24xf32> -> vector<8x24xf32>
    %23 = vector.broadcast %21 : vector<8x1xf32> to vector<8x24xf32>
    %24 = arith.mulf %22, %23 : vector<8x24xf32>
    %25 = vector.extract_strided_slice %14 {offsets = [0, 32], sizes = [8, 32], strides = [1, 1]} : vector<8x96xf32> to vector<8x32xf32>
    %26 = arith.mulf %25, %25 : vector<8x32xf32>
    %cst_12 = arith.constant dense<0.000000e+00> : vector<8xf32>
    %27 = vector.multi_reduction <add>, %26, %cst_12 [1] : vector<8x32xf32> to vector<8xf32>
    %28 = vector.shape_cast %27 : vector<8xf32> to vector<8x1xf32>
    %cst_13 = arith.constant 1.000000e-24 : f32
    %29 = vector.broadcast %cst_13 : f32 to vector<8x1xf32>
    %30 = arith.maximumf %28, %29 : vector<8x1xf32>
    %31 = math.rsqrt %30 : vector<8x1xf32>
    %cst_14 = arith.constant dense<0.000000e+00> : vector<8x24xf32>
    %32 = tpu.matmul %25, %8, %cst_14 {dimension_numbers = #tpu.dot_dimension_numbers<[1], [1], [0], [0], [0, 0, 1, 0], [], []>} : vector<8x32xf32>, vector<24x32xf32>, vector<8x24xf32> -> vector<8x24xf32>
    %33 = vector.broadcast %31 : vector<8x1xf32> to vector<8x24xf32>
    %34 = arith.mulf %32, %33 : vector<8x24xf32>
    %35 = vector.extract_strided_slice %14 {offsets = [0, 64], sizes = [8, 32], strides = [1, 1]} : vector<8x96xf32> to vector<8x32xf32>
    %36 = arith.mulf %35, %35 : vector<8x32xf32>
    %cst_15 = arith.constant dense<0.000000e+00> : vector<8xf32>
    %37 = vector.multi_reduction <add>, %36, %cst_15 [1] : vector<8x32xf32> to vector<8xf32>
    %38 = vector.shape_cast %37 : vector<8xf32> to vector<8x1xf32>
    %cst_16 = arith.constant 1.000000e-24 : f32
    %39 = vector.broadcast %cst_16 : f32 to vector<8x1xf32>
    %40 = arith.maximumf %38, %39 : vector<8x1xf32>
    %41 = math.rsqrt %40 : vector<8x1xf32>
    %cst_17 = arith.constant dense<0.000000e+00> : vector<8x24xf32>
    %42 = tpu.matmul %35, %8, %cst_17 {dimension_numbers = #tpu.dot_dimension_numbers<[1], [1], [0], [0], [0, 0, 1, 0], [], []>} : vector<8x32xf32>, vector<24x32xf32>, vector<8x24xf32> -> vector<8x24xf32>
    %43 = vector.broadcast %41 : vector<8x1xf32> to vector<8x24xf32>
    %44 = arith.mulf %42, %43 : vector<8x24xf32>
    %45 = tpu.concatenate %24, %34, %44 in 1 : vector<8x24xf32>, vector<8x24xf32>, vector<8x24xf32> -> vector<8x72xf32>
    %c0_18 = arith.constant 0 : index
    %c0_19 = arith.constant 0 : index
    %46 = vector.load %arg4[%c0_18, %c0_19] : memref<8x72xf32, #tpu.memory_space<vmem>>, vector<8x72xf32>
    tpu.vector_store %arg4[%c0_18, %c0_19], %45 {strides = array<i32>} : memref<8x72xf32, #tpu.memory_space<vmem>>, vector<8x72xf32>,
    return
  }
}

</mosaic_0001>

<bundles_post_ra>
// kernel: tpu_custom_call.1
= control target key start
LH: loop header
LB: loop body
LE: loop exit
PB: predicated region body
PF: predicated region fallthrough
CT: control target
= control target key end

     0   :  { %9 = vsyncpa [#allocation3], 0  ;;  %s790_s0 = inlined_call_operand.hbm [shape: f32[8,32], index: 0, kind: input, shape index: {}]   ;;  %s791_s1 = inlined_call_operand.hbm [shape: f32[32,96], index: 1, kind: input, shape index: {}]   ;;  %s792_s2 = inlined_call_operand.vmem [shape: f32[1,96], index: 2, kind: input, shape index: {}]   ;;  %s793_s3 = inlined_call_operand.hbm [shape: f32[24,32], index: 3, kind: input, shape index: {}]   ;;  %s794_s4 = inlined_call_operand.hbm [shape: f32[8,72], index: 4, kind: output, shape index: {}]  }
   0x1   :  { %10 = vsyncpa [#allocation6], 0 }
   0x2   :  { %11 = vsyncpa [#allocation4], 0  ;;  %s659_s15 = smov [#allocation5]   ;;  %s565_s19 = scalar_lea.hbm %s791_s1, 512 }
   0x3   :  { %s27_s16 = sshll.u32 %s659_s15, 4  ;;  %p566_p0 = scmp.ne.s32.totalorder %s791_s1, %s565_s19  ;;  %s28_s16 = int_to_ptr.vmem [resolvable:$true] %s27_s16 }
   0x4   :  { %p569_p1 = scmp.lt.u32.totalorder %s565_s19, %s791_s1 }
   0x6   :  { %p571_p2 = pnand %p569_p1, %p566_p0 }
   0x8   :  { %574 = shalt.err (!%p571_p2)
}
   0x9   :  { %s575_s24 = scalar_lea.vmem %s28_s16, 512  ;;  %p580_p4 = scmp.lt.s32.totalorder %s28_s16, %s28_s16 }
   0xa   :  { %p576_p3 = scmp.ne.s32.totalorder %s28_s16, %s575_s24  ;;  %p581_p5 = scmp.lt.s32.totalorder %s575_s24, %s575_s24 }
   0xc   :  { %p582_p6 = por %p581_p5, %p580_p4 }
   0xe   :  { %p583_p7 = pnand %p582_p6, %p576_p3 }
  0x10   :  { %586 = shalt.err (!%p583_p7)
}
  0x11   :  { %s660_s25 = smov 128   ;;  %s661_s26 = smov 8  }
  0x12   :  { %33 = dma.hbm_to_vmem [thread:$0]  %s791_s1, 512, %s28_s16, [#allocation6], %s660_s25, %s660_s25, %s661_s26  }
  0x13   :  { %s662_s29 = smov [#allocation2]   ;;  %s663_s5 = smov [#allocation7]  }
  0x14   :  { %s18_s30 = sshll.u32 %s662_s29, 4  ;;  %s41_s6 = sshll.u32 %s663_s5, 4  ;;  %s19_s30 = int_to_ptr.vmem [resolvable:$true] %s18_s30  ;;  %s42_s6 = int_to_ptr.vmem [resolvable:$true] %s41_s6 }
  0x15   :  { %s587_s9 = scalar_lea.hbm %s790_s0, 128 }
  0x16   :  { %p588_p8 = scmp.ne.s32.totalorder %s790_s0, %s587_s9  ;;  %p591_p9 = scmp.lt.u32.totalorder %s587_s9, %s790_s0 }
  0x18   :  { %p593_p10 = pnand %p591_p9, %p588_p8 }
  0x1a   :  { %596 = shalt.err (!%p593_p10)
}
  0x1b   :  { %s597_s1 = scalar_lea.vmem %s19_s30, 128  ;;  %p602_p12 = scmp.lt.s32.totalorder %s19_s30, %s19_s30 }
  0x1c   :  { %p598_p11 = scmp.ne.s32.totalorder %s19_s30, %s597_s1  ;;  %p603_p13 = scmp.lt.s32.totalorder %s597_s1, %s597_s1 }
  0x1e   :  { %p604_p0 = por %p603_p13, %p602_p12 }
  0x20   :  { %p605_p1 = pnand %p604_p0, %p598_p11 }
  0x22   :  { %608 = shalt.err (!%p605_p1)
}
  0x23   :  { %21 = dma.hbm_to_vmem [thread:$0]  %s790_s0, 128, %s19_s30, [#allocation3]  }
  0x24   :  { %s609_s18 = scalar_lea.hbm %s793_s3, 384 }
  0x25   :  { %p610_p2 = scmp.ne.s32.totalorder %s793_s3, %s609_s18  ;;  %p613_p3 = scmp.lt.u32.totalorder %s609_s18, %s793_s3 }
  0x27   :  { %p615_p4 = pnand %p613_p3, %p610_p2 }
  0x29   :  { %618 = shalt.err (!%p615_p4)
}
  0x2a   :  { %s619_s23 = scalar_lea.vmem %s42_s6, 384  ;;  %p624_p6 = scmp.lt.s32.totalorder %s42_s6, %s42_s6 }
  0x2b   :  { %p620_p5 = scmp.ne.s32.totalorder %s42_s6, %s619_s23  ;;  %p625_p7 = scmp.lt.s32.totalorder %s619_s23, %s619_s23 }
  0x2d   :  { %p626_p8 = por %p625_p7, %p624_p6 }
  0x2f   :  { %p627_p9 = pnand %p626_p8, %p620_p5 }
  0x31   :  { %630 = shalt.err (!%p627_p9)
}
  0x32   :  { %47 = dma.hbm_to_vmem [thread:$0]  %s793_s3, 384, %s42_s6, [#allocation6], %s660_s25, %s660_s25, %s661_s26  }
  0x33   :  { %653 = dma.done.wait [#allocation3], 128  }
  0x34   :  { %654 = vsyncadd [#allocation3], 4294967168 }
  0x35   :  { %655 = dma.done.wait [#allocation6], 896  }
  0x36   :  { %656 = vsyncadd [#allocation6], 4294966400  ;;  %v664_v0 = vmov 0.0|0.0   ;;  %vm665_vm0 = vmmov 0   ;;  %v666_v1 = vmov 0.0   ;;  %v83_v2 = vld [vmem:[#allocation5] sm:$0xff] }
  0x37   :  { %522 = vmatprep.subr.bf16.mxu0 %v664_v0  ;;  %492 = vmatprep.mubr.msk.f32.mxu0 %vm665_vm0, %v666_v1  ;;  %v84_v3 = vld [vmem:[#allocation5 + $0x8] sm:$0xff]  ;;  %v85_v4 = vld [vmem:[#allocation5 + $0x10] sm:$0xff]  ;;  %v86_v6 = vld [vmem:[#allocation5 + $0x18] sm:$0xff]  ;;  %vm63_vm1 = vcmask 261120   ;;  %s667_s26 = smov 96   ;;  %s668_s27 = smov 64  }
  0x38   :  { %528 = vmatprep.subr.bf16.mxu1 %v664_v0  ;;  %501 = vmatprep.mubr.msk.f32.mxu1 %vm665_vm0, %v666_v1  ;;  %v523_v5 = vpack.c.bf16 %v84_v3, %v83_v2  ;;  %v57_v7 = vld [vmem:[#allocation7] sm:$0xff]  ;;  %v58_v9 = vld [vmem:[#allocation7 + $0x8] sm:$0xff]  ;;  %v59_v10 = vld [vmem:[#allocation7 + $0x10] sm:$0xff]  ;;  %v526_v11 = vpack.c.bf16 %v86_v6, %v85_v4  ;;  %s670_s28 = smov 48   ;;  %vm431_vm3 = vcmask 195584   ;;  %s671_s29 = smov [#allocation8]  }
  0x39   :  { %v60_v8 = vmul.f32 %v57_v7, %v57_v7  ;;  %v61_v12 = vmul.f32 %v58_v9, %v58_v9  ;;  %v62_v13 = vmul.f32 %v59_v10, %v59_v10  ;;  %v82_v17 = vld [vmem:[#allocation2] sm:$0xff]  ;;  %vm751_vm2 = vmpackc.low %vm63_vm1, %vm63_vm1  ;;  %s443_s30 = sshll.u32 %s671_s29, 4  ;;  %vm433_vm4 = vcmask 392192   ;;  %s444_s30 = int_to_ptr.vmem [resolvable:$true] %s443_s30 }
  0x3a   :  { %524 = vmatpush3.bf16.msra.mxu0 %v523_v5  ;;  %v453_v32 = vld [vmem:[%s792_s2] ss:$0 sm:$0xff]  ;;  %s669_s2 = smov 24   ;;  %vm435_vm5 = vcmask 588800   ;;  %s631_s5 = scalar_lea.vmem %s444_s30, 128 }
  0x3b   :  { %525 = vmatprep.subr.bf16.mxu0 %v664_v0  ;;  %v64_v14 = vsel %vm63_vm1, %v60_v8, 0.0  ;;  %v70_v15 = vsel %vm63_vm1, %v62_v13, 0.0  ;;  %v67_v16 = vsel %vm63_vm1, %v61_v12, 0.0  ;;  %p632_p10 = scmp.ne.s32.totalorder %s444_s30, %s631_s5  ;;  %p636_p11 = scmp.lt.s32.totalorder %s444_s30, %s444_s30 }
  0x3c   :  { %65 = vadd.xlane.f32.xlu0 %v64_v14  ;;  %71 = vadd.xlane.f32.xlu1 %v70_v15  ;;  %p637_p12 = scmp.lt.s32.totalorder %s631_s5, %s631_s5 }
  0x3e   :  { %527 = vmatpush3.bf16.msra.mxu0 %v526_v11  ;;  %p638_p13 = por %p637_p12, %p636_p11 }
  0x3f   :  { %532 = vmatprep.subr.bf16.mxu0 %v664_v0 }
  0x40   :  { %68 = vadd.xlane.f32.xlu0 %v67_v16  ;;  %p639_p0 = pnand %p638_p13, %p632_p10 }
  0x41   :  { %493 = vmatmul.mubr.msk.f32.vlgmr.msra.gmra.mrb[0].mxu0 %vm63_vm1, %v82_v17 }
  0x42   :  { %510 = vmatprep.mubr.msk.f32.mxu0 %vm665_vm0, %v666_v1 }
  0xc9   :  { %v66_v18 = vpop.xlane.xlu0 %65  ;;  %v72_v22 = vpop.xlane.xlu1 %71 }
  0xca   :  { %v73_v19 = vmax.f32 %v66_v18, 1e-24  ;;  %v75_v23 = vmax.f32 %v72_v22, 1e-24 }
  0xcc   :  { %553 = vrsqrt.f32 %v73_v19 }
  0xcd   :  { %v69_v20 = vpop.xlane.xlu0 %68 }
  0xce   :  { %v74_v21 = vmax.f32 %v69_v20, 1e-24 }
  0xd0   :  { %555 = vrsqrt.f32 %v74_v21 }
  0xd1   :  { %557 = vrsqrt.f32 %v75_v23 }
  0xd6   :  { %v554_v24 = vpop.eup %553 }
  0xd7   :  { %v79_v25 = vmul.f32 %v554_v24, %v57_v7 }
  0xda   :  { %v556_v26 = vpop.eup %555 }
  0xdb   :  { %v80_v27 = vmul.f32 %v556_v26, %v58_v9  ;;  %v558_v30 = vpop.eup %557 }
  0xdc   :  { %v81_v31 = vmul.f32 %v558_v30, %v59_v10 }
  0xdd   :  { %v529_v29 = vpack.c.bf16 %v80_v27, %v79_v25 }
  0xdf   :  { %531 = vmatpush3.bf16.xpose.msk.msra.mxu1 %vm751_vm2, %v529_v29  ;;  %535 = vmatpush3.bf16.xpose.msk.msra.mxu0 %vm751_vm2, %v529_v29 }
  0xe0   :  { %499 = vmatprep.subr.mxu1 %v666_v1  ;;  %508 = vmatprep.subr.mxu0 %v666_v1 }
  0xe7   :  { %500 = vmatpush3.xpose.msk.msra.mxu1 %vm63_vm1, %v81_v31  ;;  %509 = vmatpush3.xpose.msk.msra.mxu0 %vm63_vm1, %v81_v31 }
  0xe8   :  { %536 = vmatprep.subr.bf16.mxu1 %v664_v0 }
 0x114   :  { %v163_v33 = vpop.f32.mrb[0].mxu0 }
 0x115   :  { %v164_v34 = vadd.f32 %v453_v32, %v163_v33  ;;  %v494_v35 = vpop.f32.mrb[1].mxu0 }
 0x117   :  { %265 = vrot.lane.b32.xlu1 %v164_v34, %s667_s26  ;;  %348 = vrot.lane.b32.xlu0 %v164_v34, %s668_s27  ;;  %v167_v36 = vmul.f32 %v164_v34, %v164_v34 }
 0x118   :  { %502 = vmatmul.mubr.msk.f32.vlgmr.msra.gmra.mrb[0].mxu1 %vm63_vm1, %v164_v34 }
 0x119   :  { %539 = vmatpush3.bf16.xpose.msk.msra.mxu1 %vm751_vm2, %v529_v29  ;;  %519 = vmatprep.mubr.msk.f32.mxu1 %vm665_vm0, %v666_v1  ;;  %v168_v43 = vsel %vm63_vm1, %v167_v36, 0.0 }
 0x11a   :  { %517 = vmatprep.subr.mxu1 %v666_v1 }
 0x11b   :  { %257 = vrot.lane.b32.xlu1 %v167_v36, %s667_s26 }
 0x11f   :  { %340 = vrot.lane.b32.xlu1 %v167_v36, %s668_s27 }
 0x121   :  { %518 = vmatpush3.xpose.msk.msra.mxu1 %vm63_vm1, %v81_v31 }
 0x189   :  { %v266_v37 = vpop.permute.xlu1 %265  ;;  %v349_v38 = vpop.permute.xlu0 %348 }
 0x18a   :  { %511 = vmatmul.mubr.msk.f32.vlgmr.msra.gmra.mrb[2].mxu0 %vm63_vm1, %v266_v37  ;;  %520 = vmatmul.mubr.msk.f32.vlgmr.msra.gmra.mrb[2].mxu1 %vm63_vm1, %v349_v38 }
 0x18d   :  { %v258_v39 = vpop.permute.xlu1 %257 }
 0x18e   :  { %v260_v40 = vsel %vm63_vm1, %v258_v39, 0.0 }
 0x18f   :  { %261 = vadd.xlane.f32.xlu1 %v260_v40 }
 0x191   :  { %v341_v41 = vpop.permute.xlu1 %340 }
 0x192   :  { %v343_v42 = vsel %vm63_vm1, %v341_v41, 0.0 }
 0x193   :  { %344 = vadd.xlane.f32.xlu0 %v343_v42 }
 0x197   :  { %169 = vadd.xlane.f32.xlu0 %v168_v43 }
 0x1eb   :  { %v251_v44 = vpop.f32.mrb[0].mxu1 }
 0x1ec   :  { %v503_v45 = vpop.f32.mrb[1].mxu1 }
 0x21c   :  { %v262_v46 = vpop.xlane.xlu1 %261 }
 0x21d   :  { %v263_v48 = vmax.f32 %v262_v46, 1e-24 }
 0x21f   :  { %559 = vrsqrt.f32 %v263_v48 }
 0x220   :  { %v345_v47 = vpop.xlane.xlu0 %344 }
 0x221   :  { %v346_v49 = vmax.f32 %v345_v47, 1e-24 }
 0x223   :  { %561 = vrsqrt.f32 %v346_v49 }
 0x224   :  { %v170_v58 = vpop.xlane.xlu0 %169 }
 0x225   :  { %v171_v59 = vmax.f32 %v170_v58, 1e-24 }
 0x227   :  { %563 = vrsqrt.f32 %v171_v59 }
 0x229   :  { %v560_v50 = vpop.eup %559 }
 0x22d   :  { %v562_v51 = vpop.eup %561 }
 0x231   :  { %v564_v60 = vpop.eup %563 }
 0x232   :  { %v255_v61 = vmul.f32 %v564_v60, %v251_v44 }
 0x25d   :  { %v335_v52 = vpop.f32.mrb[2].mxu0  ;;  %v418_v53 = vpop.f32.mrb[2].mxu1 }
 0x25e   :  { %v339_v54 = vmul.f32 %v560_v50, %v335_v52  ;;  %v422_v55 = vmul.f32 %v562_v51, %v418_v53  ;;  %v512_v56 = vpop.f32.mrb[3].mxu0  ;;  %v521_v57 = vpop.f32.mrb[3].mxu1 }
 0x260   :  { %424 = vrot.lane.b32.xlu0 %v339_v54, %s669_s2  ;;  %428 = vrot.lane.b32.xlu1 %v422_v55, %s670_s28 }
 0x2d2   :  { %v429_v62 = vpop.permute.xlu1 %428  ;;  %v425_v63 = vpop.permute.xlu0 %424 }
 0x2d3   :  { %v432_v0 = vsel %vm431_vm3, %v255_v61, %v425_v63 }
 0x2d4   :  { %v434_v1 = vsel %vm433_vm4, %v432_v0, %v429_v62 }
 0x2d5   :  { %436 = vst.msk [vmem:[#allocation8] sm:$0xff] %vm435_vm5, %v434_v1 }
 0x2d6   :  { %642 = shalt.err (!%p639_p0)
}
 0x2d7   :  { %s643_s8 = scalar_lea.hbm %s794_s4, 128 }
 0x2d8   :  { %p644_p1 = scmp.ne.s32.totalorder %s794_s4, %s643_s8  ;;  %p647_p2 = scmp.lt.u32.totalorder %s643_s8, %s794_s4 }
 0x2da   :  { %p649_p3 = pnand %p647_p2, %p644_p1 }
 0x2dc   :  { %652 = shalt.err (!%p649_p3)
}
 0x2dd   :  { %446 = dma.vmem_to_hbm [thread:$0]  %s444_s30, 128, %s794_s4, [#allocation4]  }
 0x2de   :  { %657 = dma.done.wait [#allocation4], 128  }
 0x2df   :  { %658 = vsyncadd [#allocation4], 4294967168 }
 0x2e0   :  { %450 = vsyncpa [#allocation3], 1 }
 0x2e1   :  { %451 = vsyncpa [#allocation6], 1 }
 0x2e2   :  { %452 = vsyncpa [#allocation4], 1 }

</bundles_post_ra>
